<compile_context>
chip_gen: v7x
topology: tpu7x:2x2x1
jax: 0.10.0
libtpu: 0.0.40
codegen_flags: <defaults>
</compile_context>

<pallas_src>
import jax
import jax.numpy as jnp
import numpy as np
from jax.experimental import pallas as pl
from jax.experimental.pallas import tpu as pltpu


# ----------------------------------------------------------------------------
# Small helpers
# ----------------------------------------------------------------------------
def _round_up(a: int, m: int) -> int:
    return ((a + m - 1) // m) * m


def _pad_axis(x, axis: int, target: int):
    pad = target - x.shape[axis]
    if pad == 0:
        return x
    cfg = [(0, 0)] * x.ndim
    cfg[axis] = (0, pad)
    return jnp.pad(x, cfg)


def _choose_row_tile(m: int, pref: int, align: int = 8):
    """Sublane-dim tile: multiple of `align`, <= pref, with padded extent."""
    m_pad = _round_up(m, align)
    t = _round_up(min(pref, m_pad), align)
    m_pad = _round_up(m_pad, t)
    return t, m_pad


def _choose_lane_tile(n: int, pref: int):
    """Lane-dim tile: a multiple of 128 that divides round_up(n,128) exactly."""
    n_pad = _round_up(n, 128)
    t = (max(128, min(pref, n_pad)) // 128) * 128
    while n_pad % t != 0:
        t -= 128
    return t, n_pad


def _choose_k_tile(nx: int, max_tk: int = 512):
    """K tile: full nx if small (single K step, no pad), else a 128-multiple."""
    if nx <= max_tk:
        return nx, nx
    nx_pad = _round_up(nx, 128)
    tk = (min(max_tk, nx_pad) // 128) * 128
    while nx_pad % tk != 0:
        tk -= 128
    return tk, nx_pad


def _vmem_limit_bytes():
    """~60% of this generation's physical VMEM (safe headroom on v7x's 64 MiB)."""
    cap = None
    try:
        cap = getattr(pltpu.get_tpu_info(), "vmem_capacity_bytes", None)
    except Exception:
        cap = None
    if not cap:
        cap = 64 * 1024 * 1024  # conservative (v7x per-TC) fallback
    return max(32 * 1024 * 1024, int(cap * 0.6))


# ----------------------------------------------------------------------------
# Kernels
# ----------------------------------------------------------------------------
def _matmul_bias_kernel(x_ref, w_ref, b_ref, o_ref, acc_ref):
    # x_ref: (tm, tk), w_ref: (tk, tn), b_ref: (1, tn),
    # o_ref: (tm, tn), acc_ref: (tm, tn) f32 scratch.  K grid axis is axis 2.
    k = pl.program_id(2)

    @pl.when(k == 0)
    def _():
        acc_ref[...] = jnp.zeros_like(acc_ref)

    acc_ref[...] += jnp.dot(
        x_ref[...], w_ref[...], preferred_element_type=jnp.float32
    )

    @pl.when(k == pl.num_programs(2) - 1)
    def _():
        o_ref[...] = (acc_ref[...] + b_ref[...].astype(jnp.float32)).astype(o_ref.dtype)


def _per_head_matmul_kernel(x_ref, w_ref, o_ref):
    # x_ref: (1, G, tt, hd), w_ref: (G*hd, tn), o_ref: (1, G, tt, tn)
    G = x_ref.shape[1]
    hd = x_ref.shape[3]
    for g in range(G):  # static, unrolled over grouped heads
        o_ref[0, g] = jnp.dot(
            x_ref[0, g],
            w_ref[pl.ds(g * hd, hd), :],
            preferred_element_type=jnp.float32,
        ).astype(o_ref.dtype)


# ----------------------------------------------------------------------------
# Wrappers
# ----------------------------------------------------------------------------
def conv1d_forward(x, weight, bias, *, tm=512, tn=512, tk=512):
    """Default path: addmm(bias, x.view(-1, nx), weight).view(..., nf)."""
    nx, nf = weight.shape
    orig_shape = x.shape
    assert orig_shape[-1] == nx
    M = int(np.prod(orig_shape[:-1])) if len(orig_shape) > 1 else 1

    tm, M_pad = _choose_row_tile(M, tm)
    tn, nf_pad = _choose_lane_tile(nf, tn)
    tk, nx_pad = _choose_k_tile(nx, tk)
    Mt, Nt, Kt = M_pad // tm, nf_pad // tn, nx_pad // tk

    x2 = _pad_axis(_pad_axis(x.reshape(M, nx), 0, M_pad), 1, nx_pad)
    w2 = _pad_axis(_pad_axis(weight, 0, nx_pad), 1, nf_pad)
    b2 = _pad_axis(bias, 0, nf_pad).reshape(1, nf_pad)

    # With a single K step, pick the grid order that keeps the *larger* operand
    # resident across the inner axis so the smaller one is the re-streamed one:
    #   order A (M outer, N inner):  HBM reads ≈ X + W * Mt
    #   order B (N outer, M inner):  HBM reads ≈ W + X * Nt
    x_bytes = M_pad * nx_pad * x.dtype.itemsize
    w_bytes = nx_pad * nf_pad * weight.dtype.itemsize
    swap = (Kt == 1) and (w_bytes + x_bytes * Nt) < (x_bytes + w_bytes * Mt)

    if swap:
        grid = (Nt, Mt, Kt)
        x_map = lambda j, i, k: (i, k)
        w_map = lambda j, i, k: (k, j)
        b_map = lambda j, i, k: (0, j)
        o_map = lambda j, i, k: (i, j)
    else:
        grid = (Mt, Nt, Kt)
        x_map = lambda i, j, k: (i, k)
        w_map = lambda i, j, k: (k, j)
        b_map = lambda i, j, k: (0, j)
        o_map = lambda i, j, k: (i, j)

    out = pl.pallas_call(
        _matmul_bias_kernel,
        out_shape=jax.ShapeDtypeStruct((M_pad, nf_pad), x.dtype),
        grid=grid,
        in_specs=[
            pl.BlockSpec((tm, tk), x_map),
            pl.BlockSpec((tk, tn), w_map),
            pl.BlockSpec((1, tn), b_map),
        ],
        out_specs=pl.BlockSpec((tm, tn), o_map),
        scratch_shapes=[pltpu.VMEM((tm, tn), jnp.float32)],
        compiler_params=pltpu.CompilerParams(
            dimension_semantics=("parallel", "parallel", "arbitrary"),
            vmem_limit_bytes=_vmem_limit_bytes(),
        ),
    )(x2, w2, b2)

    out = out[:M, :nf]
    return out.reshape(orig_shape[:-1] + (nf,))


def conv1d_forward_per_head(x, weight, bias, *, tt=256, tn=512, max_group_k=256):
    """output_per_head=True path.

    x: (B, H, T, hd) with H*hd == nx.  Returns (out, bias) with
    out: (B, H, T, nf).  No bias added (matches torch).  Operates on the native
    layout — no wrapper transposes.
    """
    B, H, T, hd = x.shape
    nx, nf = weight.shape
    assert H * hd == nx

    tn, nf_pad = _choose_lane_tile(nf, tn)
    tt, T_pad = _choose_row_tile(T, tt)

    # Group G heads per grid step (G divides H, G*hd capped near the MXU K
    # width): bigger DMAs, fewer grid steps, and the (G*hd, tn) weight slab
    # stays resident across all T tiles of a (head-group, N) pair.
    G = 1
    for g in range(H, 0, -1):
        if H % g == 0 and g * hd <= max(hd, max_group_k):
            G = g
            break

    x4 = _pad_axis(x, 2, T_pad)            # (B, H, T_pad, hd), native layout
    w2 = _pad_axis(weight, 1, nf_pad)      # (nx, nf_pad); rows already per-head order

    grid = (B, H // G, nf_pad // tn, T_pad // tt)  # T-tile axis innermost

    out = pl.pallas_call(
        _per_head_matmul_kernel,
        out_shape=jax.ShapeDtypeStruct((B, H, T_pad, nf_pad), x.dtype),
        grid=grid,
        in_specs=[
            pl.BlockSpec((1, G, tt, hd), lambda b, hg, n, t: (b, hg, t, 0)),
            pl.BlockSpec((G * hd, tn), lambda b, hg, n, t: (hg, n)),
        ],
        out_specs=pl.BlockSpec((1, G, tt, tn), lambda b, hg, n, t: (b, hg, t, n)),
        compiler_params=pltpu.CompilerParams(
            dimension_semantics=("parallel", "parallel", "parallel", "parallel"),
            vmem_limit_bytes=_vmem_limit_bytes(),
        ),
    )(x4, w2)

    out = out[:, :, :T, :nf]
    return out, bias


# ----------------------------------------------------------------------------
# Demo / correctness check
# ----------------------------------------------------------------------------
if __name__ == "__main__":
    # Small, module-consistent shapes.
    nx, nf = 32, 32          # input / output features
    B, H, T = 2, 4, 8        # batch, heads, sequence
    hd = nx // H             # per-head feature size

    key = jax.random.PRNGKey(0)
    k_w, k_x = jax.random.split(key)

    # Deterministic param init matching nn.init.normal_(std=0.02) / zeros bias.
    weight = (0.02 * jax.random.normal(k_w, (nx, nf))).astype(jnp.float32)
    bias = jnp.zeros((nf,), dtype=jnp.float32)

    # ---- default path: x is (B, T, nx) ----
    x = jax.random.normal(k_x, (B, T, nx), dtype=jnp.float32)
    out = conv1d_forward(x, weight, bias)
    out = jax.block_until_ready(out)
    ref = jnp.einsum("btx,xf->btf", x, weight) + bias
    np.testing.assert_allclose(np.asarray(out), np.asarray(ref), rtol=1e-5, atol=1e-5)

    # ---- output_per_head path: x is (B, H, T, hd) ----
    x_ph = x.reshape(B, T, H, hd).transpose(0, 2, 1, 3)   # (B, H, T, hd)
    out_ph, bias_out = conv1d_forward_per_head(x_ph, weight, bias)
    out_ph = jax.block_until_ready(out_ph)
    w_heads = weight.reshape(H, hd, nf)
    ref_ph = jnp.einsum("bhtd,hdf->bhtf", x_ph, w_heads)   # no bias add, matches torch
    np.testing.assert_allclose(np.asarray(out_ph), np.asarray(ref_ph), rtol=1e-5, atol=1e-5)
    assert bias_out.shape == (nf,)

    print("KERNEL_OK")
</pallas_src>

<mosaic_0001>
module attributes {stable_mosaic.version = 11 : i64} {
  func.func @_matmul_bias_kernel(%arg0: i32, %arg1: i32, %arg2: i32, %arg3: memref<16x32xf32, #tpu.memory_space<vmem>>, %arg4: memref<32x128xf32, #tpu.memory_space<vmem>>, %arg5: memref<1x128xf32, #tpu.memory_space<vmem>>, %arg6: memref<16x128xf32, #tpu.memory_space<vmem>>, %arg7: memref<16x128xf32, #tpu.memory_space<vmem>>) attributes {dimension_semantics = [#tpu.dimension_semantics<parallel>, #tpu.dimension_semantics<parallel>, #tpu.dimension_semantics<arbitrary>], iteration_bounds = array<i64: 1, 1, 1>, scalar_prefetch = 0 : i64, scratch_operands = 1 : i64, tpu.core_type = #tpu.core_type<tc>, window_params = [{transform_indices = @transform_0, window_bounds = array<i64: 16, 32>}, {transform_indices = @transform_1, window_bounds = array<i64: 32, 128>}, {transform_indices = @transform_2, window_bounds = array<i64: 1, 128>}, {transform_indices = @transform_3, window_bounds = array<i64: 16, 128>}]} {
    %c0_i32 = arith.constant 0 : i32
    %0 = arith.cmpi eq, %arg2, %c0_i32 : i32
    %1 = arith.extui %0 : i1 to i32
    %c0_i32_0 = arith.constant 0 : i32
    %2 = arith.cmpi ne, %1, %c0_i32_0 : i32
    scf.if %2 {
      %cst_10 = arith.constant 0.000000e+00 : f32
      %12 = vector.broadcast %cst_10 : f32 to vector<16x128xf32>
      %c0_11 = arith.constant 0 : index
      %c0_12 = arith.constant 0 : index
      %13 = vector.load %arg7[%c0_11, %c0_12] : memref<16x128xf32, #tpu.memory_space<vmem>>, vector<16x128xf32>
      tpu.vector_store %arg7[%c0_11, %c0_12], %12 {strides = array<i32>} : memref<16x128xf32, #tpu.memory_space<vmem>>, vector<16x128xf32>,
    } else {
    }
    %c0 = arith.constant 0 : index
    %c0_1 = arith.constant 0 : index
    %3 = vector.load %arg7[%c0, %c0_1] : memref<16x128xf32, #tpu.memory_space<vmem>>, vector<16x128xf32>
    %c0_2 = arith.constant 0 : index
    %c0_3 = arith.constant 0 : index
    %4 = vector.load %arg3[%c0_2, %c0_3] : memref<16x32xf32, #tpu.memory_space<vmem>>, vector<16x32xf32>
    %c0_4 = arith.constant 0 : index
    %c0_5 = arith.constant 0 : index
    %5 = vector.load %arg4[%c0_4, %c0_5] : memref<32x128xf32, #tpu.memory_space<vmem>>, vector<32x128xf32>
    %cst = arith.constant dense<0.000000e+00> : vector<16x128xf32>
    %6 = tpu.matmul %4, %5, %cst {dimension_numbers = #tpu.dot_dimension_numbers<[1], [0], [0], [1], [0, 0, 1, 1], [], []>} : vector<16x32xf32>, vector<32x128xf32>, vector<16x128xf32> -> vector<16x128xf32>
    %7 = arith.addf %3, %6 : vector<16x128xf32>
    %c0_6 = arith.constant 0 : index
    %c0_7 = arith.constant 0 : index
    %8 = vector.load %arg7[%c0_6, %c0_7] : memref<16x128xf32, #tpu.memory_space<vmem>>, vector<16x128xf32>
    tpu.vector_store %arg7[%c0_6, %c0_7], %7 {strides = array<i32>} : memref<16x128xf32, #tpu.memory_space<vmem>>, vector<16x128xf32>,
    %c0_i32_8 = arith.constant 0 : i32
    %9 = arith.cmpi eq, %arg2, %c0_i32_8 : i32
    %10 = arith.extui %9 : i1 to i32
    %c0_i32_9 = arith.constant 0 : i32
    %11 = arith.cmpi ne, %10, %c0_i32_9 : i32
    scf.if %11 {
      %c0_10 = arith.constant 0 : index
      %c0_11 = arith.constant 0 : index
      %12 = vector.load %arg7[%c0_10, %c0_11] : memref<16x128xf32, #tpu.memory_space<vmem>>, vector<16x128xf32>
      %c0_12 = arith.constant 0 : index
      %c0_13 = arith.constant 0 : index
      %13 = vector.load %arg5[%c0_12, %c0_13] : memref<1x128xf32, #tpu.memory_space<vmem>>, vector<1x128xf32>
      %14 = vector.broadcast %13 : vector<1x128xf32> to vector<16x128xf32>
      %15 = arith.addf %12, %14 : vector<16x128xf32>
      %c0_14 = arith.constant 0 : index
      %c0_15 = arith.constant 0 : index
      %16 = vector.load %arg6[%c0_14, %c0_15] : memref<16x128xf32, #tpu.memory_space<vmem>>, vector<16x128xf32>
      tpu.vector_store %arg6[%c0_14, %c0_15], %15 {strides = array<i32>} : memref<16x128xf32, #tpu.memory_space<vmem>>, vector<16x128xf32>,
    } else {
    }
    return
  }
  func.func @transform_0(%arg0: i32, %arg1: i32, %arg2: i32) -> (i32, i32) {
    %c0_i32 = arith.constant 0 : i32
    return %arg0, %arg2 : i32, i32
  }
  func.func @transform_1(%arg0: i32, %arg1: i32, %arg2: i32) -> (i32, i32) {
    %c0_i32 = arith.constant 0 : i32
    return %arg2, %arg1 : i32, i32
  }
  func.func @transform_2(%arg0: i32, %arg1: i32, %arg2: i32) -> (i32, i32) {
    %c0_i32 = arith.constant 0 : i32
    %c0_i32_0 = arith.constant 0 : i32
    return %c0_i32, %arg1 : i32, i32
  }
  func.func @transform_3(%arg0: i32, %arg1: i32, %arg2: i32) -> (i32, i32) {
    %c0_i32 = arith.constant 0 : i32
    return %arg0, %arg1 : i32, i32
  }
}

</mosaic_0001>

<bundles_post_ra>
// kernel: tpu_custom_call.1
= control target key start
LH: loop header
LB: loop body
LE: loop exit
PB: predicated region body
PF: predicated region fallthrough
CT: control target
= control target key end

     0   :  { %8 = vsyncpa [#allocation4], 0  ;;  %s355_s0 = inlined_call_operand.hbm [shape: f32[16,32], index: 0, kind: input, shape index: {}]   ;;  %s356_s1 = inlined_call_operand.hbm [shape: f32[32,128], index: 1, kind: input, shape index: {}]   ;;  %s357_s2 = inlined_call_operand.vmem [shape: f32[1,128], index: 2, kind: input, shape index: {}]   ;;  %s358_s3 = inlined_call_operand.hbm [shape: f32[16,128], index: 3, kind: output, shape index: {}]  }
   0x1   :  { %9 = vsyncpa [#allocation7], 0 }
   0x2   :  { %10 = vsyncpa [#allocation5], 0  ;;  %s282_s12 = smov [#allocation3]   ;;  %s210_s16 = scalar_lea.hbm %s355_s0, 256 }
   0x3   :  { %s16_s13 = sshll.u32 %s282_s12, 4  ;;  %p211_p0 = scmp.ne.s32.totalorder %s355_s0, %s210_s16  ;;  %s17_s13 = int_to_ptr.vmem [resolvable:$true] %s16_s13 }
   0x4   :  { %p214_p1 = scmp.lt.u32.totalorder %s210_s16, %s355_s0 }
   0x6   :  { %p216_p2 = pnand %p214_p1, %p211_p0 }
   0x8   :  { %219 = shalt.err (!%p216_p2)
}
   0x9   :  { %s220_s21 = scalar_lea.vmem %s17_s13, 256  ;;  %p225_p4 = scmp.lt.s32.totalorder %s17_s13, %s17_s13 }
   0xa   :  { %p221_p3 = scmp.ne.s32.totalorder %s17_s13, %s220_s21  ;;  %p226_p5 = scmp.lt.s32.totalorder %s220_s21, %s220_s21 }
   0xc   :  { %p227_p6 = por %p226_p5, %p225_p4 }
   0xe   :  { %p228_p7 = pnand %p227_p6, %p221_p3 }
  0x10   :  { %231 = shalt.err (!%p228_p7)
}
  0x11   :  { %s283_s22 = smov 128   ;;  %s284_s23 = smov 8  }
  0x12   :  { %22 = dma.hbm_to_vmem [thread:$0]  %s355_s0, 256, %s17_s13, [#allocation4], %s283_s22, %s283_s22, %s284_s23  }
  0x13   :  { %s285_s26 = smov [#allocation6]   ;;  %s232_s30 = scalar_lea.hbm %s356_s1, 512 }
  0x14   :  { %s28_s27 = sshll.u32 %s285_s26, 4  ;;  %p233_p8 = scmp.ne.s32.totalorder %s356_s1, %s232_s30  ;;  %s29_s27 = int_to_ptr.vmem [resolvable:$true] %s28_s27 }
  0x15   :  { %p236_p9 = scmp.lt.u32.totalorder %s232_s30, %s356_s1 }
  0x17   :  { %p238_p10 = pnand %p236_p9, %p233_p8 }
  0x19   :  { %241 = shalt.err (!%p238_p10)
}
  0x1a   :  { %s242_s8 = scalar_lea.vmem %s29_s27, 512  ;;  %p247_p12 = scmp.lt.s32.totalorder %s29_s27, %s29_s27 }
  0x1b   :  { %p243_p11 = scmp.ne.s32.totalorder %s29_s27, %s242_s8  ;;  %p248_p13 = scmp.lt.s32.totalorder %s242_s8, %s242_s8 }
  0x1d   :  { %p249_p0 = por %p248_p13, %p247_p12 }
  0x1f   :  { %p250_p1 = pnand %p249_p0, %p243_p11 }
  0x21   :  { %253 = shalt.err (!%p250_p1)
}
  0x22   :  { %34 = dma.hbm_to_vmem [thread:$0]  %s356_s1, 512, %s29_s27, [#allocation7], %s283_s22, %s283_s22, %s284_s23  }
  0x23   :  { %276 = dma.done.wait [#allocation4], 256  }
  0x24   :  { %277 = vsyncadd [#allocation4], 4294967040 }
  0x25   :  { %278 = dma.done.wait [#allocation7], 512  }
  0x26   :  { %279 = vsyncadd [#allocation7], 4294966784  ;;  %vm57_vm0 = vcmask 261120   ;;  %v53_v0 = vld [vmem:[#allocation6] sm:$0xff]  ;;  %v54_v1 = vld [vmem:[#allocation6 + $0x8] sm:$0xff]  ;;  %s286_s11 = smov [#allocation8]  }
  0x27   :  { %v55_v2 = vld [vmem:[#allocation6 + $0x10] sm:$0xff]  ;;  %v197_v3 = vpack.c.bf16 %v54_v1, %v53_v0  ;;  %v56_v4 = vld [vmem:[#allocation6 + $0x18] sm:$0xff]  ;;  %s164_s12 = sshll.u32 %s286_s11, 4  ;;  %s165_s12 = int_to_ptr.vmem [resolvable:$true] %s164_s12 }
  0x28   :  { %v51_v5 = vld [vmem:[#allocation3] sm:$0xff]  ;;  %v201_v6 = vpack.c.bf16 %v56_v4, %v55_v2  ;;  %v52_v7 = vld [vmem:[#allocation3 + $0x8] sm:$0xff]  ;;  %s254_s13 = scalar_lea.vmem %s165_s12, 256  ;;  %p259_p3 = scmp.lt.s32.totalorder %s165_s12, %s165_s12 }
  0x29   :  { %194 = vmatprep.mubr.msk.f32.mxu0 %vm57_vm0, %v51_v5  ;;  %198 = vmatprep.subr.bf16.mxu0 %v197_v3  ;;  %v179_v8 = vld [vmem:[%s357_s2] ss:$0 sm:$0xff]  ;;  %p255_p2 = scmp.ne.s32.totalorder %s165_s12, %s254_s13  ;;  %p260_p4 = scmp.lt.s32.totalorder %s254_s13, %s254_s13 }
  0x2a   :  { %200 = vmatpush3.bf16.msra.mxu0 %v197_v3 }
  0x2b   :  { %202 = vmatprep.subr.bf16.mxu0 %v201_v6  ;;  %p261_p5 = por %p260_p4, %p259_p3 }
  0x2d   :  { %p262_p6 = pnand %p261_p5, %p255_p2 }
  0x2e   :  { %204 = vmatpush3.bf16.msra.mxu0 %v201_v6 }
  0x31   :  { %195 = vmatmul.mubr.msk.f32.vlgmr.msra.gmra.mrb[0].mxu0 %vm57_vm0, %v52_v7 }
 0x104   :  { %v196_v9 = vpop.f32.mrb[0].mxu0 }
 0x105   :  { %v156_v10 = vadd.f32 %v196_v9, %v179_v8  ;;  %v130_v11 = vpop.f32.mrb[1].mxu0 }
 0x106   :  { %v155_v12 = vadd.f32 %v179_v8, %v130_v11 }
 0x107   :  { %158 = vst [vmem:[#allocation8 + $0x8] sm:$0xff] %v156_v10 }
 0x108   :  { %157 = vst [vmem:[#allocation8] sm:$0xff] %v155_v12 }
 0x109   :  { %265 = shalt.err (!%p262_p6)
}
 0x10a   :  { %s266_s2 = scalar_lea.hbm %s358_s3, 256 }
 0x10b   :  { %p267_p7 = scmp.ne.s32.totalorder %s358_s3, %s266_s2  ;;  %p270_p8 = scmp.lt.u32.totalorder %s266_s2, %s358_s3 }
 0x10d   :  { %p272_p9 = pnand %p270_p8, %p267_p7 }
 0x10f   :  { %275 = shalt.err (!%p272_p9)
}
 0x110   :  { %170 = dma.vmem_to_hbm [thread:$0]  %s165_s12, 256, %s358_s3, [#allocation5], %s283_s22, %s283_s22, %s284_s23  }
 0x111   :  { %280 = dma.done.wait [#allocation5], 256  }
 0x112   :  { %281 = vsyncadd [#allocation5], 4294967040 }
 0x113   :  { %174 = vsyncpa [#allocation4], 1 }
 0x114   :  { %175 = vsyncpa [#allocation7], 1 }
 0x115   :  { %176 = vsyncpa [#allocation5], 1 }

</bundles_post_ra>
